<compile_context>
chip_gen: v5e
topology: v5e:2x2
jax: 0.10.0
libtpu: 0.0.40
codegen_flags: <defaults>
</compile_context>

<pallas_src>
import jax
import jax.numpy as jnp
from jax.experimental import pallas as pl
from jax.experimental.pallas import tpu as pltpu


# ---- packed-parameter slab layout (row offsets are multiples of 16) -------------
_R1, _R2, _R3, _R4 = 0, 64, 192, 256          # w1:64 rows, w2:128, w3:64, w4:3
_W_ROWS = 272                                  # 259 used rows, padded to mult of 16
_B_ROWS = 264                                  # 259 used rows, padded to mult of 8
_FLOPS_PER_ROW = 2 * (3 * 64 + 64 * 128 + 128 * 64 + 64 * 3) + (64 + 128 + 64 + 3)


def _round_up(n, m):
    return ((n + m - 1) // m) * m


def _vmem_limit_bytes(tile):
    """Conservative VMEM footprint estimate for the chosen batch tile."""
    io = 2 * 2 * (3 * tile * 4)                        # double-buffered (3,T) f32 in + out
    slabs = 2 * (_W_ROWS * 128 * 2 + _B_ROWS * 4)      # resident slabs (double-buffer worst case)
    temps = tile * (64 + 128 + 64) * 6 + 2 * 3 * tile * 4  # f32 accumulators + bf16 copies
    est = io + slabs + temps
    return int(min(max(2 * est, 32 * 1024 * 1024), 48 * 1024 * 1024))


def _ik_mlp_kernel(x_ref, w_ref, b_ref, o_ref):
    # x_ref: (3, TILE_B) f32, batch on lanes.
    x = x_ref[...]

    # Static slices of the resident parameter slabs (sublane-tile aligned offsets).
    w1 = w_ref[_R1:_R1 + 64, 0:3].astype(jnp.float32)     # (64, 3)
    w2 = w_ref[_R2:_R2 + 128, 0:64]                        # (128, 64) bf16
    w3 = w_ref[_R3:_R3 + 64, 0:128]                        # (64, 128) bf16
    w4 = w_ref[_R4:_R4 + 3, 0:64]                          # (3, 64)   bf16
    b1 = b_ref[_R1:_R1 + 64, :]                            # (64, 1)   f32
    b2 = b_ref[_R2:_R2 + 128, :]
    b3 = b_ref[_R3:_R3 + 64, :]
    b4 = b_ref[_R4:_R4 + 3, :]

    # fc1 + ReLU on the VPU: a K=3 contraction wastes a full MXU pass, so use
    # 3 broadcast-FMAs in f32 instead (also keeps the input in f32).
    h = (w1[:, 0:1] * x[0:1, :]
         + w1[:, 1:2] * x[1:2, :]
         + w1[:, 2:3] * x[2:3, :]
         + b1)                                             # (64, T) f32
    h = jnp.maximum(h, 0.0).astype(jnp.bfloat16)

    # fc2 + ReLU : (128,64) @ (64,T) -> (128,T)  (MXU, f32 accumulate)
    h = jnp.dot(w2, h, preferred_element_type=jnp.float32) + b2
    h = jnp.maximum(h, 0.0).astype(jnp.bfloat16)

    # fc3 + ReLU : (64,128) @ (128,T) -> (64,T)
    h = jnp.dot(w3, h, preferred_element_type=jnp.float32) + b3
    h = jnp.maximum(h, 0.0).astype(jnp.bfloat16)

    # fc4 (no activation) : (3,64) @ (64,T) -> (3,T), lane-dense store.
    y = jnp.dot(w4, h, preferred_element_type=jnp.float32) + b4
    o_ref[...] = y.astype(o_ref.dtype)


def ik_mlp_forward(x, w_slab, b_slab, *, tile_b=4096):
    """x: (B, 3) float32.  w_slab: (272, 128) bf16.  b_slab: (264, 1) f32."""
    B = x.shape[0]
    tile_b = max(128, _round_up(tile_b, 128))

    # Pad batch only to the 128-lane granule (Pallas masks the partial last block).
    Bp = _round_up(max(B, 1), 128)
    tile = min(tile_b, Bp)
    # Guarantee >= 2 grid steps for mid-size batches so v7x's two TCs both engage.
    if Bp >= 256 and tile >= Bp:
        tile = _round_up(-(-Bp // 2), 128)
    grid = pl.cdiv(Bp, tile)

    # Wrapper-side pad + transpose (cheap; keep under the same jax.jit as the kernel).
    xt = jnp.pad(x, ((0, Bp - B), (0, 0))).T              # (3, Bp) f32

    in_specs = [
        pl.BlockSpec((3, tile), lambda i: (0, i)),          # streamed input tile
        pl.BlockSpec((_W_ROWS, 128), lambda i: (0, 0)),     # resident weight slab
        pl.BlockSpec((_B_ROWS, 1), lambda i: (0, 0)),       # resident bias slab
    ]
    out_spec = pl.BlockSpec((3, tile), lambda i: (0, i))

    cost = pl.CostEstimate(
        flops=int(Bp * _FLOPS_PER_ROW),
        transcendentals=0,
        bytes_accessed=int(Bp * 3 * 4 * 2 + _W_ROWS * 128 * 2 + _B_ROWS * 4),
    )

    out_t = pl.pallas_call(
        _ik_mlp_kernel,
        out_shape=jax.ShapeDtypeStruct((3, Bp), jnp.float32),
        grid_spec=pltpu.PrefetchScalarGridSpec(
            num_scalar_prefetch=0,
            grid=(grid,),
            in_specs=in_specs,
            out_specs=out_spec,
        ),
        compiler_params=pltpu.CompilerParams(
            dimension_semantics=("parallel",),
            vmem_limit_bytes=_vmem_limit_bytes(tile),
        ),
        cost_estimate=cost,
    )(xt, w_slab, b_slab)

    return out_t[:, :B].T                                  # (B, 3) f32


def init_params(key):
    """Deterministic synthetic init matching nn.Linear shapes.

    Weights are (out_features, in_features) bf16; biases are (out_features, 1) f32.
    """
    dims = [(3, 64), (64, 128), (128, 64), (64, 3)]
    params = {}
    for i, (fan_in, fan_out) in enumerate(dims, start=1):
        key, kw, kb = jax.random.split(key, 3)
        bound = 1.0 / jnp.sqrt(fan_in)  # PyTorch default uniform bound
        w = jax.random.uniform(kw, (fan_out, fan_in), jnp.float32,
                               minval=-bound, maxval=bound)
        b = jax.random.uniform(kb, (fan_out, 1), jnp.float32,
                               minval=-bound, maxval=bound)
        params[f"w{i}"] = w.astype(jnp.bfloat16)
        params[f"b{i}"] = b
    return params


def pack_params(params):
    """Pack the 4 weights into one (272,128) bf16 slab and 4 biases into one (264,1) f32 slab."""
    def place(slab, a, r0):
        return slab.at[r0:r0 + a.shape[0], 0:a.shape[1]].set(a.astype(slab.dtype))

    w_slab = jnp.zeros((_W_ROWS, 128), jnp.bfloat16)
    w_slab = place(w_slab, params["w1"], _R1)
    w_slab = place(w_slab, params["w2"], _R2)
    w_slab = place(w_slab, params["w3"], _R3)
    w_slab = place(w_slab, params["w4"], _R4)

    b_slab = jnp.zeros((_B_ROWS, 1), jnp.float32)
    b_slab = place(b_slab, params["b1"], _R1)
    b_slab = place(b_slab, params["b2"], _R2)
    b_slab = place(b_slab, params["b3"], _R3)
    b_slab = place(b_slab, params["b4"], _R4)
    return w_slab, b_slab


def reference_forward_mixed(x, params):
    """Mirror the kernel's dtype path: fc1 in f32 (bf16 weights upcast), fc2-4 bf16
    activations with f32 accumulation."""
    xT = x.T                                               # (3, B) f32
    w1 = params["w1"].astype(jnp.float32)
    h = (w1[:, 0:1] * xT[0:1, :] + w1[:, 1:2] * xT[1:2, :]
         + w1[:, 2:3] * xT[2:3, :] + params["b1"])
    h = jnp.maximum(h, 0.0).astype(jnp.bfloat16)
    h = jnp.maximum(jnp.dot(params["w2"], h, preferred_element_type=jnp.float32)
                    + params["b2"], 0.0).astype(jnp.bfloat16)
    h = jnp.maximum(jnp.dot(params["w3"], h, preferred_element_type=jnp.float32)
                    + params["b3"], 0.0).astype(jnp.bfloat16)
    y = jnp.dot(params["w4"], h, preferred_element_type=jnp.float32) + params["b4"]
    return y.T


def reference_forward_f32(x, params):
    """Pure f32 reference (loose tolerance vs the mixed-precision kernel)."""
    h = x
    for i in range(1, 5):
        w = params[f"w{i}"].astype(jnp.float32)
        b = params[f"b{i}"].astype(jnp.float32)
        h = h @ w.T + b[:, 0]
        if i < 4:
            h = jnp.maximum(h, 0.0)
    return h


if __name__ == "__main__":
    key = jax.random.PRNGKey(0)
    key, kx1, kx2 = jax.random.split(key, 3)
    params = init_params(key)
    w_slab, b_slab = pack_params(params)

    # Keep pad/transpose/slice + pallas_call under one jit (single dispatch).
    fwd = jax.jit(lambda xx: ik_mlp_forward(xx, w_slab, b_slab))

    # Small batch: single grid step after padding to the 128-lane granule.
    B1 = 8
    x1 = jax.random.normal(kx1, (B1, 3), jnp.float32)
    out1 = jax.block_until_ready(fwd(x1))
    assert out1.shape == (B1, 3), out1.shape
    assert jnp.allclose(out1, reference_forward_mixed(x1, params), atol=1e-2, rtol=1e-2), \
        "mismatch vs mixed-precision reference (B=8)"
    assert jnp.allclose(out1, reference_forward_f32(x1, params), atol=5e-2, rtol=5e-2), \
        "mismatch vs f32 reference (B=8)"

    # Larger ragged batch: pads to 640 lanes, 2 grid steps (second block partial).
    B2 = 600
    x2 = jax.random.normal(kx2, (B2, 3), jnp.float32)
    out2 = jax.block_until_ready(fwd(x2))
    assert out2.shape == (B2, 3), out2.shape
    assert jnp.allclose(out2, reference_forward_mixed(x2, params), atol=1e-2, rtol=1e-2), \
        "mismatch vs mixed-precision reference (B=600)"
    assert jnp.allclose(out2, reference_forward_f32(x2, params), atol=5e-2, rtol=5e-2), \
        "mismatch vs f32 reference (B=600)"

    print("KERNEL_OK")
</pallas_src>

<mosaic_0001>
module attributes {stable_mosaic.version = 11 : i64} {
  func.func @_ik_mlp_kernel(%arg0: i32, %arg1: memref<3x128xf32, #tpu.memory_space<vmem>>, %arg2: memref<272x128xbf16, #tpu.memory_space<vmem>>, %arg3: memref<264x1xf32, #tpu.memory_space<vmem>>, %arg4: memref<3x128xf32, #tpu.memory_space<vmem>>) attributes {dimension_semantics = [#tpu.dimension_semantics<parallel>], iteration_bounds = array<i64: 1>, scalar_prefetch = 0 : i64, scratch_operands = 0 : i64, tpu.core_type = #tpu.core_type<tc>, window_params = [{transform_indices = @transform_0, window_bounds = array<i64: 3, 128>}, {pipeline_mode = #tpu.pipeline_mode<synchronous>, transform_indices = @transform_1, window_bounds = array<i64: 272, 128>}, {pipeline_mode = #tpu.pipeline_mode<synchronous>, transform_indices = @transform_2, window_bounds = array<i64: 264, 1>}, {transform_indices = @transform_3, window_bounds = array<i64: 3, 128>}]} {
    %c0 = arith.constant 0 : index
    %c0_0 = arith.constant 0 : index
    %0 = vector.load %arg1[%c0, %c0_0] : memref<3x128xf32, #tpu.memory_space<vmem>>, vector<3x128xf32>
    %c0_1 = arith.constant 0 : index
    %c0_2 = arith.constant 0 : index
    %1 = vector.load %arg2[%c0_1, %c0_2] : memref<272x128xbf16, #tpu.memory_space<vmem>>, vector<64x3xbf16>
    %2 = arith.extf %1 : vector<64x3xbf16> to vector<64x3xf32>
    %c64 = arith.constant 64 : index
    %c0_3 = arith.constant 0 : index
    %3 = vector.load %arg2[%c64, %c0_3] : memref<272x128xbf16, #tpu.memory_space<vmem>>, vector<128x64xbf16>
    %c192 = arith.constant 192 : index
    %c0_4 = arith.constant 0 : index
    %4 = vector.load %arg2[%c192, %c0_4] : memref<272x128xbf16, #tpu.memory_space<vmem>>, vector<64x128xbf16>
    %c256 = arith.constant 256 : index
    %c0_5 = arith.constant 0 : index
    %5 = vector.load %arg2[%c256, %c0_5] : memref<272x128xbf16, #tpu.memory_space<vmem>>, vector<3x64xbf16>
    %c0_6 = arith.constant 0 : index
    %c0_7 = arith.constant 0 : index
    %6 = vector.load %arg3[%c0_6, %c0_7] : memref<264x1xf32, #tpu.memory_space<vmem>>, vector<64x1xf32>
    %c64_8 = arith.constant 64 : index
    %c0_9 = arith.constant 0 : index
    %7 = vector.load %arg3[%c64_8, %c0_9] : memref<264x1xf32, #tpu.memory_space<vmem>>, vector<128x1xf32>
    %c192_10 = arith.constant 192 : index
    %c0_11 = arith.constant 0 : index
    %8 = vector.load %arg3[%c192_10, %c0_11] : memref<264x1xf32, #tpu.memory_space<vmem>>, vector<64x1xf32>
    %c256_12 = arith.constant 256 : index
    %c0_13 = arith.constant 0 : index
    %9 = vector.load %arg3[%c256_12, %c0_13] : memref<264x1xf32, #tpu.memory_space<vmem>>, vector<3x1xf32>
    %10 = vector.extract_strided_slice %2 {offsets = [0, 0], sizes = [64, 1], strides = [1, 1]} : vector<64x3xf32> to vector<64x1xf32>
    %11 = vector.extract_strided_slice %0 {offsets = [0, 0], sizes = [1, 128], strides = [1, 1]} : vector<3x128xf32> to vector<1x128xf32>
    %12 = vector.broadcast %10 : vector<64x1xf32> to vector<64x128xf32>
    %13 = vector.broadcast %11 : vector<1x128xf32> to vector<64x128xf32>
    %14 = arith.mulf %12, %13 : vector<64x128xf32>
    %15 = vector.extract_strided_slice %2 {offsets = [0, 1], sizes = [64, 1], strides = [1, 1]} : vector<64x3xf32> to vector<64x1xf32>
    %16 = vector.extract_strided_slice %0 {offsets = [1, 0], sizes = [1, 128], strides = [1, 1]} : vector<3x128xf32> to vector<1x128xf32>
    %17 = vector.broadcast %15 : vector<64x1xf32> to vector<64x128xf32>
    %18 = vector.broadcast %16 : vector<1x128xf32> to vector<64x128xf32>
    %19 = arith.mulf %17, %18 : vector<64x128xf32>
    %20 = arith.addf %14, %19 : vector<64x128xf32>
    %21 = vector.extract_strided_slice %2 {offsets = [0, 2], sizes = [64, 1], strides = [1, 1]} : vector<64x3xf32> to vector<64x1xf32>
    %22 = vector.extract_strided_slice %0 {offsets = [2, 0], sizes = [1, 128], strides = [1, 1]} : vector<3x128xf32> to vector<1x128xf32>
    %23 = vector.broadcast %21 : vector<64x1xf32> to vector<64x128xf32>
    %24 = vector.broadcast %22 : vector<1x128xf32> to vector<64x128xf32>
    %25 = arith.mulf %23, %24 : vector<64x128xf32>
    %26 = arith.addf %20, %25 : vector<64x128xf32>
    %27 = vector.broadcast %6 : vector<64x1xf32> to vector<64x128xf32>
    %28 = arith.addf %26, %27 : vector<64x128xf32>
    %cst = arith.constant 0.000000e+00 : f32
    %29 = vector.broadcast %cst : f32 to vector<64x128xf32>
    %30 = arith.maximumf %28, %29 : vector<64x128xf32>
    %31 = arith.truncf %30 : vector<64x128xf32> to vector<64x128xbf16>
    %cst_14 = arith.constant dense<0.000000e+00> : vector<128x128xf32>
    %32 = tpu.matmul %3, %31, %cst_14 {dimension_numbers = #tpu.dot_dimension_numbers<[1], [0], [0], [1], [0, 0, 1, 1], [], []>} : vector<128x64xbf16>, vector<64x128xbf16>, vector<128x128xf32> -> vector<128x128xf32>
    %33 = vector.broadcast %7 : vector<128x1xf32> to vector<128x128xf32>
    %34 = arith.addf %32, %33 : vector<128x128xf32>
    %cst_15 = arith.constant 0.000000e+00 : f32
    %35 = vector.broadcast %cst_15 : f32 to vector<128x128xf32>
    %36 = arith.maximumf %34, %35 : vector<128x128xf32>
    %37 = arith.truncf %36 : vector<128x128xf32> to vector<128x128xbf16>
    %cst_16 = arith.constant dense<0.000000e+00> : vector<64x128xf32>
    %38 = tpu.matmul %4, %37, %cst_16 {dimension_numbers = #tpu.dot_dimension_numbers<[1], [0], [0], [1], [0, 0, 1, 1], [], []>} : vector<64x128xbf16>, vector<128x128xbf16>, vector<64x128xf32> -> vector<64x128xf32>
    %39 = vector.broadcast %8 : vector<64x1xf32> to vector<64x128xf32>
    %40 = arith.addf %38, %39 : vector<64x128xf32>
    %cst_17 = arith.constant 0.000000e+00 : f32
    %41 = vector.broadcast %cst_17 : f32 to vector<64x128xf32>
    %42 = arith.maximumf %40, %41 : vector<64x128xf32>
    %43 = arith.truncf %42 : vector<64x128xf32> to vector<64x128xbf16>
    %cst_18 = arith.constant dense<0.000000e+00> : vector<3x128xf32>
    %44 = tpu.matmul %5, %43, %cst_18 {dimension_numbers = #tpu.dot_dimension_numbers<[1], [0], [0], [1], [0, 0, 1, 1], [], []>} : vector<3x64xbf16>, vector<64x128xbf16>, vector<3x128xf32> -> vector<3x128xf32>
    %45 = vector.broadcast %9 : vector<3x1xf32> to vector<3x128xf32>
    %46 = arith.addf %44, %45 : vector<3x128xf32>
    %c0_19 = arith.constant 0 : index
    %c0_20 = arith.constant 0 : index
    %47 = vector.load %arg4[%c0_19, %c0_20] : memref<3x128xf32, #tpu.memory_space<vmem>>, vector<3x128xf32>
    tpu.vector_store %arg4[%c0_19, %c0_20], %46 {strides = array<i32>} : memref<3x128xf32, #tpu.memory_space<vmem>>, vector<3x128xf32>,
    return
  }
  func.func @transform_0(%arg0: i32) -> (i32, i32) {
    %c0_i32 = arith.constant 0 : i32
    %c0_i32_0 = arith.constant 0 : i32
    return %c0_i32, %arg0 : i32, i32
  }
  func.func @transform_1(%arg0: i32) -> (i32, i32) {
    %c0_i32 = arith.constant 0 : i32
    %c0_i32_0 = arith.constant 0 : i32
    %c0_i32_1 = arith.constant 0 : i32
    return %c0_i32, %c0_i32_0 : i32, i32
  }
  func.func @transform_2(%arg0: i32) -> (i32, i32) {
    %c0_i32 = arith.constant 0 : i32
    %c0_i32_0 = arith.constant 0 : i32
    %c0_i32_1 = arith.constant 0 : i32
    return %c0_i32, %c0_i32_0 : i32, i32
  }
  func.func @transform_3(%arg0: i32) -> (i32, i32) {
    %c0_i32 = arith.constant 0 : i32
    %c0_i32_0 = arith.constant 0 : i32
    return %c0_i32, %arg0 : i32, i32
  }
}

</mosaic_0001>

<bundles_post_ra>
// kernel: _lambda_.1
= control target key start
LH: loop header
LB: loop body
LE: loop exit
PB: predicated region body
PF: predicated region fallthrough
CT: control target
= control target key end

     0   :  { %8 = vsyncpa [#allocation3], 0  ;;  %s1005_s0 = inlined_call_operand.vmem [shape: f32[3,128], index: 0, kind: input, shape index: {}]   ;;  %s1006_s1 = inlined_call_operand.hbm [shape: bf16[272,128], index: 1, kind: input, shape index: {}]   ;;  %s1007_s2 = inlined_call_operand.hbm [shape: f32[264,1], index: 2, kind: input, shape index: {}]   ;;  %s1008_s3 = inlined_call_operand.vmem [shape: f32[3,128], index: 3, kind: output, shape index: {}]  }
   0x1   :  { %s16_s14 = sshll.u32 %s1006_s1, 4  ;;  %s17_s14 = int_to_ptr.hbm [resolvable:$true] %s16_s14 }
   0x2   :  { %9 = vsyncpa [#allocation5], 0  ;;  %s916_s15 = smov [#allocation2]   ;;  %s29_s19 = sshll.u32 %s1007_s2, 4  ;;  %s30_s19 = int_to_ptr.hbm [resolvable:$true] %s29_s19 }
   0x3   :  { %s18_s16 = sshll.u32 %s916_s15, 4  ;;  %s917_s20 = smov 64   ;;  %s19_s16 = int_to_ptr.vmem [resolvable:$true] %s18_s16 }
   0x4   :  { %s918_s21 = smov 4   ;;  %s919_s22 = smov [#allocation4]  }
   0x5   :  { %24 = dma.hbm_to_vmem [thread:$0]  %s17_s14, 2176, %s19_s16, [#allocation3], %s917_s20, %s917_s20, %s918_s21  }
   0x6   :  { %s31_s23 = sshll.u32 %s919_s22, 4  ;;  %s920_s24 = smov 128   ;;  %s32_s23 = int_to_ptr.vmem [resolvable:$true] %s31_s23 }
   0x7   :  { %s921_s25 = smov 8  }
   0x8   :  { %37 = dma.hbm_to_vmem [thread:$0]  %s30_s19, 4224, %s32_s23, [#allocation5], %s920_s24, %s920_s24, %s921_s25  }
   0x9   :  { %912 = dma.done.wait [#allocation3], 2176  }
   0xa   :  { %913 = vsyncadd [#allocation3], 4294965120 }
   0xb   :  { %914 = dma.done.wait [#allocation5], 4224  }
   0xc   :  { %915 = vsyncadd [#allocation5], 4294963072  ;;  %v922_v0 = vmov 2   ;;  %v923_v1 = vmov 1   ;;  %v767_v2 = vld [vmem:[#allocation2 + $0x18] sm:$0xff]   ;;  %v766_v3 = vld [vmem:[#allocation2 + $0x10] sm:$0xff]  }
   0xd   :  { %801 = vset.pattern.permute.xlu1 %v922_v0  ;;  %813 = vset.pattern.permute.xlu2 %v923_v1  ;;  %v763_v4 = vunpack.c.l.bf16 %v767_v2  ;;  %v764_v5 = vunpack.c.h.bf16 %v767_v2  ;;  %v759_v6 = vunpack.c.l.bf16 %v766_v3  ;;  %v760_v7 = vunpack.c.h.bf16 %v766_v3  ;;  %v765_v10 = vld [vmem:[#allocation2 + $0x8] sm:$0xff]   ;;  %v750_v15 = vld [vmem:[#allocation2] sm:$0xff]   ;;  %v95_v16 = vld [vmem:[#allocation4 + $0x30] sm:$0xff] }
   0xe   :  { %789 = vset.pattern.permute.xlu0 %v923_v1  ;;  %v924_v11 = vmov 0   ;;  %v755_v12 = vunpack.c.l.bf16 %v765_v10  ;;  %v756_v13 = vunpack.c.h.bf16 %v765_v10  ;;  %v96_v17 = vld [vmem:[#allocation4 + $0x38] sm:$0xff]  ;;  %v751_v18 = vunpack.c.l.bf16 %v750_v15  ;;  %v91_v21 = vld [vmem:[#allocation4 + $0x10] sm:$0xff]  ;;  %v93_v22 = vld [vmem:[#allocation4 + $0x20] sm:$0xff] }
   0xf   :  { %v802_v8 = vpack.i.bf16 %v764_v5, %v763_v4  ;;  %v814_v9 = vpack.i.bf16 %v760_v7, %v759_v6  ;;  %v752_v19 = vunpack.c.h.bf16 %v750_v15  ;;  %v94_v23 = vld [vmem:[#allocation4 + $0x28] sm:$0xff]  ;;  %v109_v25 = vld [vmem:[#allocation4 + $0xa0] sm:$0xff]  ;;  %v92_v26 = vld [vmem:[#allocation4 + $0x18] sm:$0xff]  ;;  %vm449_vm0 = vcmask 523264  }
  0x10   :  { %v826_v14 = vpack.i.bf16 %v756_v13, %v755_v12  ;;  %v90_v24 = vld [vmem:[#allocation4 + $0x8] sm:$0xff]  ;;  %v89_v27 = vld [vmem:[#allocation4] sm:$0xff]  ;;  %v108_v28 = vld [vmem:[#allocation4 + $0x98] sm:$0xff] }
  0x11   :  { %803 = vperm.xlu1 %801, %v802_v8   ;;  %791 = vperm.xlu0 %789, %v802_v8   ;;  %v845_v20 = vpack.i.bf16 %v752_v19, %v751_v18  ;;  %v111_v29 = vld [vmem:[#allocation4 + $0xb0] sm:$0xff]  ;;  %v112_v30 = vld [vmem:[#allocation4 + $0xb8] sm:$0xff]  ;;  %v110_v32 = vld [vmem:[#allocation4 + $0xa8] sm:$0xff] }
  0x12   :  { %815 = vperm.xlu2 %813, %v814_v9   ;;  %v103_v31 = vld [vmem:[#allocation4 + $0x70] sm:$0xff]  ;;  %v102_v34 = vld [vmem:[#allocation4 + $0x68] sm:$0xff]  ;;  %v105_v35 = vld [vmem:[#allocation4 + $0x80] sm:$0xff] }
  0x13   :  { %v107_v33 = vld [vmem:[#allocation4 + $0x90] sm:$0xff]  ;;  %v106_v36 = vld [vmem:[#allocation4 + $0x88] sm:$0xff]  ;;  %v97_v37 = vld [vmem:[#allocation4 + $0x40] sm:$0xff] }
  0x14   :  { %v104_v38 = vld [vmem:[#allocation4 + $0x78] sm:$0xff]  ;;  %v101_v39 = vld [vmem:[#allocation4 + $0x60] sm:$0xff]  ;;  %v99_v41 = vld [vmem:[#allocation4 + $0x50] sm:$0xff] }
  0x15   :  { %v120_v40 = vld [vmem:[#allocation4 + $0xf8] sm:$0xff]  ;;  %v115_v43 = vld [vmem:[#allocation4 + $0xd0] sm:$0xff]  ;;  %v98_v44 = vld [vmem:[#allocation4 + $0x48] sm:$0xff] }
  0x16   :  { %v100_v42 = vld [vmem:[#allocation4 + $0x58] sm:$0xff]  ;;  %v119_v45 = vld [vmem:[#allocation4 + $0xf0] sm:$0xff]  ;;  %v114_v46 = vld [vmem:[#allocation4 + $0xc8] sm:$0xff] }
  0x17   :  { %v117_v48 = vld [vmem:[#allocation4 + $0xe0] sm:$0xff]  ;;  %v118_v49 = vld [vmem:[#allocation4 + $0xe8] sm:$0xff]  ;;  %v116_v52 = vld [vmem:[#allocation4 + $0xd8] sm:$0xff] }
  0x18   :  { %v113_v54 = vld [vmem:[#allocation4 + $0xc0] sm:$0xff]  ;;  %v47_v55 = vld [vmem:[%s1005_s0] sm:$0x7] }
  0x19   :  { %807 = vset.pattern.permute.xlu1 %v924_v11  ;;  %795 = vset.pattern.permute.xlu0 %v924_v11  ;;  %v954_v58 = vperm.slane %v47_v55, 1  ;;  %v956_v59 = vperm.slane %v47_v55, 0  ;;  %v958_v60 = vperm.slane %v47_v55, 2 }
  0x1a   :  { %819 = vset.pattern.permute.xlu2 %v922_v0  ;;  %797 = vperm.xlu0 %795, %v802_v8  }
  0x1b   :  { %821 = vperm.xlu2 %819, %v814_v9   ;;  %809 = vperm.xlu1 %807, %v814_v9  }
  0x22   :  { %827 = vperm.xlu0 %795, %v826_v14  }
  0x23   :  { %825 = vset.pattern.permute.xlu2 %v924_v11  ;;  %301 = vperm.xlu1 %807, %v95_v16  }
  0x24   :  { %306 = vperm.xlu2 %825, %v96_v17  }
  0x2a   :  { %846 = vperm.xlu0 %795, %v845_v20  }
  0x2b   :  { %831 = vset.pattern.permute.xlu1 %v923_v1 }
  0x2c   :  { %837 = vset.pattern.permute.xlu2 %v922_v0  ;;  %833 = vperm.xlu1 %831, %v826_v14  }
  0x2d   :  { %839 = vperm.xlu2 %837, %v826_v14  }
  0x32   :  { %281 = vperm.xlu0 %795, %v91_v21  }
  0x34   :  { %843 = vset.pattern.permute.xlu1 %v924_v11 }
  0x35   :  { %844 = vset.pattern.permute.xlu2 %v924_v11  ;;  %291 = vperm.xlu1 %843, %v93_v22  }
  0x36   :  { %296 = vperm.xlu2 %844, %v94_v23  }
  0x3a   :  { %276 = vperm.xlu0 %795, %v90_v24  }
  0x3d   :  { %850 = vset.pattern.permute.xlu1 %v923_v1 }
  0x3e   :  { %856 = vset.pattern.permute.xlu2 %v922_v0  ;;  %852 = vperm.xlu1 %850, %v845_v20   ;;  %v121_v0 = vld [vmem:[#allocation4 + $0x100] sm:$0x7] }
  0x3f   :  { %858 = vperm.xlu2 %856, %v845_v20  }
  0x42   :  { %391 = vperm.xlu0 %795, %v109_v25  }
  0x46   :  { %862 = vset.pattern.permute.xlu1 %v924_v11 }
  0x47   :  { %863 = vset.pattern.permute.xlu2 %v924_v11  ;;  %286 = vperm.xlu1 %862, %v92_v26  }
  0x48   :  { %271 = vperm.xlu2 %863, %v89_v27  }
  0x4a   :  { %386 = vperm.xlu0 %795, %v108_v28  }
  0x4f   :  { %401 = vperm.xlu1 %862, %v111_v29  }
  0x50   :  { %406 = vperm.xlu2 %863, %v112_v30  }
  0x52   :  { %361 = vperm.xlu0 %795, %v103_v31  }
  0x57   :  { %396 = vperm.xlu1 %862, %v110_v32  }
  0x58   :  { %381 = vperm.xlu2 %863, %v107_v33  }
  0x5a   :  { %356 = vperm.xlu0 %795, %v102_v34  }
  0x5f   :  { %371 = vperm.xlu1 %862, %v105_v35  }
  0x60   :  { %376 = vperm.xlu2 %863, %v106_v36  }
  0x62   :  { %331 = vperm.xlu0 %795, %v97_v37  }
  0x67   :  { %366 = vperm.xlu1 %862, %v104_v38  }
  0x68   :  { %351 = vperm.xlu2 %863, %v101_v39  }
  0x6a   :  { %584 = vperm.xlu0 %795, %v120_v40  }
  0x6c   :  { %v816_v47 = vpop.permute.xlu2 %815 }
  0x6d   :  { %v818_v20 = vunpack.i.h.bf16 %v816_v47  ;;  %v817_v28 = vunpack.i.l.bf16 %v816_v47 }
  0x6f   :  { %341 = vperm.xlu1 %862, %v99_v41   ;;  %v209_v29 = vmul.f32 %v818_v20, %v954_v58  ;;  %v208_v35 = vmul.f32 %v817_v28, %v954_v58 }
  0x70   :  { %346 = vperm.xlu2 %863, %v100_v42  }
  0x72   :  { %559 = vperm.xlu0 %795, %v115_v43  }
  0x75   :  { %v822_v53 = vpop.permute.xlu2 %821 }
  0x76   :  { %v824_v23 = vunpack.i.h.bf16 %v822_v53  ;;  %v823_v30 = vunpack.i.l.bf16 %v822_v53 }
  0x77   :  { %336 = vperm.xlu1 %862, %v98_v44  }
  0x78   :  { %579 = vperm.xlu2 %863, %v119_v45   ;;  %v258_v31 = vmul.f32 %v824_v23, %v958_v60  ;;  %v257_v36 = vmul.f32 %v823_v30, %v958_v60 }
  0x7a   :  { %554 = vperm.xlu0 %795, %v114_v46  }
  0x7e   :  { %v307_v6 = vpop.permute.xlu2 %306 }
  0x7f   :  { %569 = vperm.xlu1 %862, %v117_v48  }
  0x80   :  { %574 = vperm.xlu2 %863, %v118_v49  }
  0x83   :  { %v804_v50 = vpop.permute.xlu1 %803  ;;  %v792_v51 = vpop.permute.xlu0 %791 }
  0x84   :  { %v794_v56 = vunpack.i.h.bf16 %v792_v51  ;;  %v793_v57 = vunpack.i.l.bf16 %v792_v51  ;;  %v806_v61 = vunpack.i.h.bf16 %v804_v50  ;;  %v805_v62 = vunpack.i.l.bf16 %v804_v50 }
  0x86   :  { %v210_v1 = vmul.f32 %v793_v57, %v954_v58  ;;  %v211_v2 = vmul.f32 %v794_v56, %v954_v58  ;;  %v259_v9 = vmul.f32 %v805_v62, %v958_v60  ;;  %v260_v10 = vmul.f32 %v806_v61, %v958_v60 }
  0x87   :  { %564 = vperm.xlu1 %862, %v116_v52   ;;  %v840_v22 = vpop.permute.xlu2 %839 }
  0x88   :  { %549 = vperm.xlu2 %863, %v113_v54   ;;  %v841_v49 = vunpack.i.l.bf16 %v840_v22  ;;  %v842_v61 = vunpack.i.h.bf16 %v840_v22 }
  0x8c   :  { %v798_v63 = vpop.permute.xlu0 %797 }
  0x8d   :  { %v800_v3 = vunpack.i.h.bf16 %v798_v63  ;;  %v799_v4 = vunpack.i.l.bf16 %v798_v63  ;;  %v810_v5 = vpop.permute.xlu1 %809 }
  0x8e   :  { %v812_v17 = vunpack.i.h.bf16 %v810_v5  ;;  %v811_v24 = vunpack.i.l.bf16 %v810_v5 }
  0x8f   :  { %v169_v7 = vmul.f32 %v799_v4, %v956_v59  ;;  %v170_v8 = vmul.f32 %v800_v3, %v956_v59  ;;  %654 = vperm.xlu1 %862, %v121_v0  }
  0x90   :  { %v168_v25 = vmul.f32 %v812_v17, %v956_v59  ;;  %v167_v32 = vmul.f32 %v811_v24, %v956_v59  ;;  %v297_v39 = vpop.permute.xlu2 %296 }
  0x91   :  { %v219_v11 = vadd.f32 %v211_v2, %v170_v8  ;;  %v218_v12 = vadd.f32 %v210_v1, %v169_v7  ;;  %v255_v1 = vmul.f32 %v841_v49, %v958_v60 }
  0x92   :  { %v217_v33 = vadd.f32 %v209_v29, %v168_v25  ;;  %v216_v38 = vadd.f32 %v208_v35, %v167_v32  ;;  %v737_v32 = vld [vmem:[#allocation2 + $0x20] sm:$0xff]  ;;  %v742_v35 = vld [vmem:[#allocation2 + $0x48] sm:$0xff] }
  0x93   :  { %v267_v13 = vadd.f32 %v259_v9, %v218_v12  ;;  %v268_v14 = vadd.f32 %v260_v10, %v219_v11 }
  0x94   :  { %v828_v27 = vpop.permute.xlu0 %827  ;;  %v266_v37 = vadd.f32 %v258_v31, %v217_v33  ;;  %v265_v42 = vadd.f32 %v257_v36, %v216_v38  ;;  %v741_v33 = vld [vmem:[#allocation2 + $0x40] sm:$0xff]  ;;  %v739_v36 = vld [vmem:[#allocation2 + $0x30] sm:$0xff]  ;;  %v740_v38 = vld [vmem:[#allocation2 + $0x38] sm:$0xff] }
  0x95   :  { %v302_v15 = vpop.permute.xlu1 %301  ;;  %v316_v16 = vadd.f32 %v307_v6, %v268_v14  ;;  %v829_v44 = vunpack.i.l.bf16 %v828_v27  ;;  %v830_v50 = vunpack.i.h.bf16 %v828_v27  ;;  %v256_v14 = vmul.f32 %v842_v61, %v958_v60 }
  0x96   :  { %v315_v18 = vadd.f32 %v302_v15, %v267_v13  ;;  %v314_v41 = vadd.f32 %v297_v39, %v266_v37  ;;  %v743_v37 = vld [vmem:[#allocation2 + $0x50] sm:$0xff]  ;;  %v744_v39 = vld [vmem:[#allocation2 + $0x58] sm:$0xff] }
  0x97   :  { %v324_v19 = vmax.f32 %v316_v16, 0.0  ;;  %v165_v51 = vmul.f32 %v829_v44, %v956_v59  ;;  %v166_v2 = vmul.f32 %v830_v50, %v956_v59 }
  0x98   :  { %v323_v21 = vmax.f32 %v315_v18, 0.0  ;;  %v322_v47 = vmax.f32 %v314_v41, 0.0 }
  0x99   :  { %v859_v55 = vpop.permute.xlu2 %858 }
  0x9a   :  { %v328_v26 = vpack.c.bf16 %v324_v19, %v323_v21  ;;  %v861_v56 = vunpack.i.h.bf16 %v859_v55  ;;  %v860_v57 = vunpack.i.l.bf16 %v859_v55 }
  0x9c   :  { %478 = vmatpush.bf16.msra.mxu0 %v328_v26  ;;  %768 = vmatpush.bf16.msra.mxu3 %v328_v26  ;;  %v847_v40 = vpop.permute.xlu0 %846  ;;  %v253_v8 = vmul.f32 %v860_v57, %v958_v60  ;;  %v254_v9 = vmul.f32 %v861_v56, %v958_v60 }
  0x9d   :  { %v849_v62 = vunpack.i.h.bf16 %v847_v40  ;;  %v848_v63 = vunpack.i.l.bf16 %v847_v40 }
  0x9e   :  { %v834_v34 = vpop.permute.xlu1 %833 }
  0x9f   :  { %v835_v45 = vunpack.i.l.bf16 %v834_v34  ;;  %v836_v52 = vunpack.i.h.bf16 %v834_v34  ;;  %v163_v10 = vmul.f32 %v848_v63, %v956_v59  ;;  %v164_v11 = vmul.f32 %v849_v62, %v956_v59  ;;  %v738_v34 = vld [vmem:[#allocation2 + $0x28] sm:$0xff] }
  0xa1   :  { %v206_v53 = vmul.f32 %v835_v45, %v954_v58  ;;  %v207_v3 = vmul.f32 %v836_v52, %v954_v58 }
  0xa2   :  { %v272_v21 = vpop.permute.xlu2 %271 }
  0xa3   :  { %v214_v4 = vadd.f32 %v206_v53, %v165_v51  ;;  %v215_v16 = vadd.f32 %v207_v3, %v166_v2 }
  0xa4   :  { %v282_v0 = vpop.permute.xlu0 %281 }
  0xa5   :  { %v263_v15 = vadd.f32 %v255_v1, %v214_v4  ;;  %v264_v23 = vadd.f32 %v256_v14, %v215_v16 }
  0xa7   :  { %v292_v43 = vpop.permute.xlu1 %291  ;;  %v311_v22 = vadd.f32 %v282_v0, %v263_v15 }
  0xa8   :  { %v313_v46 = vadd.f32 %v292_v43, %v265_v42 }
  0xa9   :  { %v319_v28 = vmax.f32 %v311_v22, 0.0 }
  0xaa   :  { %v321_v48 = vmax.f32 %v313_v46, 0.0  ;;  %v407_v50 = vpop.permute.xlu2 %406 }
  0xac   :  { %v327_v54 = vpack.c.bf16 %v322_v47, %v321_v48  ;;  %v277_v24 = vpop.permute.xlu0 %276 }
  0xae   :  { %479 = vmatpush.bf16.msra.mxu0 %v327_v54  ;;  %769 = vmatpush.bf16.msra.mxu3 %v327_v54 }
  0xb0   :  { %v853_v5 = vpop.permute.xlu1 %852 }
  0xb1   :  { %v855_v6 = vunpack.i.h.bf16 %v853_v5  ;;  %v854_v7 = vunpack.i.l.bf16 %v853_v5 }
  0xb2   :  { %v382_v55 = vpop.permute.xlu2 %381 }
  0xb3   :  { %v204_v12 = vmul.f32 %v854_v7, %v954_v58  ;;  %v205_v13 = vmul.f32 %v855_v6, %v954_v58 }
  0xb4   :  { %v392_v54 = vpop.permute.xlu0 %391 }
  0xb5   :  { %v212_v17 = vadd.f32 %v204_v12, %v163_v10  ;;  %v213_v18 = vadd.f32 %v205_v13, %v164_v11 }
  0xb7   :  { %v261_v19 = vadd.f32 %v253_v8, %v212_v17  ;;  %v262_v20 = vadd.f32 %v254_v9, %v213_v18 }
  0xb9   :  { %v287_v25 = vpop.permute.xlu1 %286  ;;  %v309_v27 = vadd.f32 %v272_v21, %v261_v19  ;;  %v310_v59 = vadd.f32 %v277_v24, %v262_v20 }
  0xba   :  { %v312_v26 = vadd.f32 %v287_v25, %v264_v23  ;;  %v377_v63 = vpop.permute.xlu2 %376 }
  0xbb   :  { %v317_v58 = vmax.f32 %v309_v27, 0.0  ;;  %v318_v31 = vmax.f32 %v310_v59, 0.0 }
  0xbc   :  { %v320_v29 = vmax.f32 %v312_v26, 0.0  ;;  %v387_v62 = vpop.permute.xlu0 %386 }
  0xbd   :  { %v325_v60 = vpack.c.bf16 %v318_v31, %v317_v58 }
  0xbe   :  { %v326_v30 = vpack.c.bf16 %v320_v29, %v319_v28 }
  0xc0   :  { %480 = vmatpush.bf16.msra.mxu0 %v326_v30  ;;  %770 = vmatpush.bf16.msra.mxu3 %v326_v30 }
  0xc1   :  { %v402_v48 = vpop.permute.xlu1 %401 }
  0xc2   :  { %v352_v18 = vpop.permute.xlu2 %351 }
  0xc4   :  { %481 = vmatpush.bf16.msra.mxu0 %v325_v60  ;;  %771 = vmatpush.bf16.msra.mxu3 %v325_v60  ;;  %v362_v12 = vpop.permute.xlu0 %361 }
  0xc7   :  { %712 = vmatmul.msk.bf16.vlgmr.msra.gmra.mxu0 %vm449_vm0, %v737_v32  ;;  %716 = vmatmul.msk.bf16.vlgmr.msra.gmra.mxu3 %vm449_vm0, %v741_v33 }
  0xc9   :  { %v397_v52 = vpop.permute.xlu1 %396 }
  0xca   :  { %v347_v60 = vpop.permute.xlu2 %346 }
  0xcc   :  { %v357_v59 = vpop.permute.xlu0 %356 }
  0xd1   :  { %v372_v61 = vpop.permute.xlu1 %371 }
  0xd7   :  { %713 = vmatmul.msk.bf16.gmra.mxu0 %vm449_vm0, %v738_v34  ;;  %717 = vmatmul.msk.bf16.gmra.mxu3 %vm449_vm0, %v742_v35 }
  0xd9   :  { %v367_v8 = vpop.permute.xlu1 %366 }
  0xe1   :  { %v342_v25 = vpop.permute.xlu1 %341 }
  0xe7   :  { %714 = vmatmul.msk.bf16.gmra.mxu0 %vm449_vm0, %v739_v36  ;;  %718 = vmatmul.msk.bf16.gmra.mxu3 %vm449_vm0, %v743_v37 }
  0xe9   :  { %v337_v37 = vpop.permute.xlu1 %336 }
  0xf7   :  { %715 = vmatmul.msk.bf16.gmra.mxu0 %vm449_vm0, %v740_v38  ;;  %719 = vmatmul.msk.bf16.gmra.mxu3 %vm449_vm0, %v744_v39 }
 0x144   :  { %v992_v40 = vpop.f32.mrf.mxu0 }
 0x14a   :  { %v503_v41 = vpop.f32.mrf.mxu3 }
 0x14b   :  { %v504_v20 = vadd.f32 %v503_v41, %v372_v61 }
 0x14c   :  { %v994_v42 = vpop.f32.mrf.mxu0 }
 0x14d   :  { %v531_v26 = vmax.f32 %v504_v20, 0.0  ;;  %v486_v38 = vadd.f32 %v994_v42, %v337_v37  ;;  %v746_v42 = vld [vmem:[#allocation2 + $0x68] sm:$0xff] }
 0x152   :  { %v505_v43 = vpop.f32.mrf.mxu3 }
 0x153   :  { %v506_v15 = vadd.f32 %v505_v43, %v377_v63  ;;  %v332_v43 = vpop.permute.xlu0 %331 }
 0x154   :  { %v996_v44 = vpop.f32.mrf.mxu0 }
 0x155   :  { %v532_v22 = vmax.f32 %v506_v15, 0.0  ;;  %v489_v35 = vadd.f32 %v996_v44, %v342_v25 }
 0x157   :  { %v543_v30 = vpack.c.bf16 %v532_v22, %v531_v26 }
 0x15a   :  { %v508_v45 = vpop.f32.mrf.mxu3 }
 0x15b   :  { %v509_v13 = vadd.f32 %v508_v45, %v382_v55  ;;  %v484_v45 = vadd.f32 %v992_v40, %v332_v43  ;;  %v580_v55 = vpop.permute.xlu2 %579 }
 0x15c   :  { %v490_v47 = vpop.f32.mrf.mxu0 }
 0x15d   :  { %v533_v21 = vmax.f32 %v509_v13, 0.0  ;;  %v491_v32 = vadd.f32 %v490_v47, %v347_v60 }
 0x15f   :  { %v526_v39 = vmax.f32 %v491_v32, 0.0 }
 0x162   :  { %v510_v46 = vpop.f32.mrf.mxu3 }
 0x163   :  { %v511_v9 = vadd.f32 %v510_v46, %v387_v62  ;;  %v525_v46 = vmax.f32 %v489_v35, 0.0 }
 0x164   :  { %v493_v51 = vpop.f32.mrf.mxu0 }
 0x165   :  { %v534_v16 = vmax.f32 %v511_v9, 0.0  ;;  %v494_v58 = vadd.f32 %v493_v51, %v352_v18  ;;  %v540_v47 = vpack.c.bf16 %v526_v39, %v525_v46  ;;  %v748_v51 = vld [vmem:[#allocation2 + $0x78] sm:$0xff] }
 0x167   :  { %v544_v24 = vpack.c.bf16 %v534_v16, %v533_v21  ;;  %v527_v36 = vmax.f32 %v494_v58, 0.0 }
 0x16a   :  { %v513_v49 = vpop.f32.mrf.mxu3 }
 0x16b   :  { %v514_v5 = vadd.f32 %v513_v49, %v392_v54  ;;  %v523_v49 = vmax.f32 %v484_v45, 0.0 }
 0x16c   :  { %v495_v56 = vpop.f32.mrf.mxu0 }
 0x16d   :  { %v535_v14 = vmax.f32 %v514_v5, 0.0  ;;  %v496_v28 = vadd.f32 %v495_v56, %v357_v59 }
 0x16f   :  { %v528_v33 = vmax.f32 %v496_v28, 0.0 }
 0x171   :  { %v541_v41 = vpack.c.bf16 %v528_v33, %v527_v36 }
 0x172   :  { %v515_v53 = vpop.f32.mrf.mxu3 }
 0x173   :  { %v516_v3 = vadd.f32 %v515_v53, %v397_v52  ;;  %v747_v52 = vld [vmem:[#allocation2 + $0x70] sm:$0xff] }
 0x174   :  { %v498_v1 = vpop.f32.mrf.mxu0 }
 0x175   :  { %v536_v10 = vmax.f32 %v516_v3, 0.0  ;;  %v499_v27 = vadd.f32 %v498_v1, %v362_v12 }
 0x177   :  { %v545_v17 = vpack.c.bf16 %v536_v10, %v535_v14  ;;  %v529_v31 = vmax.f32 %v499_v27, 0.0  ;;  %v88_v27 = vld [vmem:[#allocation2 + $0x80] sm:$0x3] }
 0x17a   :  { %v518_v57 = vpop.f32.mrf.mxu3 }
 0x17b   :  { %v519_v0 = vadd.f32 %v518_v57, %v402_v48  ;;  %v524_v48 = vmax.f32 %v486_v38, 0.0  ;;  %v585_v57 = vpop.permute.xlu0 %584 }
 0x17c   :  { %v500_v19 = vpop.f32.mrf.mxu0 }
 0x17d   :  { %v537_v6 = vmax.f32 %v519_v0, 0.0  ;;  %v501_v23 = vadd.f32 %v500_v19, %v367_v8  ;;  %v539_v44 = vpack.c.bf16 %v524_v48, %v523_v49 }
 0x17f   :  { %v530_v29 = vmax.f32 %v501_v23, 0.0 }
 0x181   :  { %v542_v34 = vpack.c.bf16 %v530_v29, %v529_v31 }
 0x182   :  { %v520_v2 = vpop.f32.mrf.mxu3 }
 0x183   :  { %v521_v4 = vadd.f32 %v520_v2, %v407_v50  ;;  %v745_v50 = vld [vmem:[#allocation2 + $0x60] sm:$0xff] }
 0x185   :  { %v538_v7 = vmax.f32 %v521_v4, 0.0  ;;  %v570_v4 = vpop.permute.xlu1 %569 }
 0x187   :  { %v546_v11 = vpack.c.bf16 %v538_v7, %v537_v6  ;;  %v560_v6 = vpop.permute.xlu0 %559  ;;  %v575_v7 = vpop.permute.xlu2 %574 }
 0x189   :  { %611 = vmatpush.bf16.msra.mxu1 %v546_v11  ;;  %772 = vmatpush.bf16.msra.mxu2 %v546_v11 }
 0x18d   :  { %612 = vmatpush.bf16.msra.mxu1 %v545_v17  ;;  %773 = vmatpush.bf16.msra.mxu2 %v545_v17  ;;  %v565_v9 = vpop.permute.xlu1 %564 }
 0x18f   :  { %v555_v16 = vpop.permute.xlu0 %554  ;;  %v550_v20 = vpop.permute.xlu2 %549 }
 0x191   :  { %613 = vmatpush.bf16.msra.mxu1 %v544_v24  ;;  %774 = vmatpush.bf16.msra.mxu2 %v544_v24 }
 0x195   :  { %614 = vmatpush.bf16.msra.mxu1 %v543_v30  ;;  %775 = vmatpush.bf16.msra.mxu2 %v543_v30  ;;  %v655_v59 = vpop.permute.xlu1 %654 }
 0x199   :  { %615 = vmatpush.bf16.msra.mxu1 %v542_v34  ;;  %776 = vmatpush.bf16.msra.mxu2 %v542_v34 }
 0x19d   :  { %616 = vmatpush.bf16.msra.mxu1 %v541_v41  ;;  %777 = vmatpush.bf16.msra.mxu2 %v541_v41 }
 0x1a1   :  { %617 = vmatpush.bf16.msra.mxu1 %v540_v47  ;;  %778 = vmatpush.bf16.msra.mxu2 %v540_v47 }
 0x1a5   :  { %618 = vmatpush.bf16.msra.mxu1 %v539_v44  ;;  %779 = vmatpush.bf16.msra.mxu2 %v539_v44 }
 0x1a8   :  { %619 = vmatmul.bf16.vlgmr.msra.gmra.mxu1 %v745_v50  ;;  %634 = vmatmul.bf16.vlgmr.msra.gmra.mxu2 %v748_v51 }
 0x1b8   :  { %624 = vmatmul.bf16.gmra.mxu1 %v746_v42 }
 0x1c8   :  { %629 = vmatmul.bf16.gmra.mxu1 %v747_v52 }
 0x225   :  { %v620_v40 = vpop.f32.mrf.mxu1 }
 0x226   :  { %v621_v21 = vadd.f32 %v620_v40, %v550_v20 }
 0x228   :  { %v640_v25 = vmax.f32 %v621_v21, 0.0 }
 0x22b   :  { %v635_v53 = vpop.f32.mrf.mxu2 }
 0x22c   :  { %v636_v56 = vadd.f32 %v635_v53, %v580_v55 }
 0x22d   :  { %v622_v54 = vpop.f32.mrf.mxu1 }
 0x22e   :  { %v646_v0 = vmax.f32 %v636_v56, 0.0  ;;  %v623_v17 = vadd.f32 %v622_v54, %v555_v16 }
 0x230   :  { %v641_v23 = vmax.f32 %v623_v17, 0.0 }
 0x232   :  { %v648_v26 = vpack.c.bf16 %v641_v23, %v640_v25 }
 0x233   :  { %v637_v61 = vpop.f32.mrf.mxu2 }
 0x234   :  { %v638_v62 = vadd.f32 %v637_v61, %v585_v57 }
 0x235   :  { %v625_v63 = vpop.f32.mrf.mxu1 }
 0x236   :  { %v647_v1 = vmax.f32 %v638_v62, 0.0  ;;  %v626_v13 = vadd.f32 %v625_v63, %v560_v6 }
 0x238   :  { %v651_v2 = vpack.c.bf16 %v647_v1, %v646_v0  ;;  %v642_v22 = vmax.f32 %v626_v13, 0.0 }
 0x23a   :  { %664 = vmatpush.bf16.msrb.mxu2 %v651_v2 }
 0x23d   :  { %v627_v3 = vpop.f32.mrf.mxu1 }
 0x23e   :  { %v628_v11 = vadd.f32 %v627_v3, %v565_v9 }
 0x240   :  { %v643_v18 = vmax.f32 %v628_v11, 0.0 }
 0x242   :  { %v649_v24 = vpack.c.bf16 %v643_v18, %v642_v22 }
 0x245   :  { %v630_v5 = vpop.f32.mrf.mxu1 }
 0x246   :  { %v631_v8 = vadd.f32 %v630_v5, %v570_v4 }
 0x248   :  { %v644_v14 = vmax.f32 %v631_v8, 0.0 }
 0x24d   :  { %v632_v10 = vpop.f32.mrf.mxu1 }
 0x24e   :  { %v633_v12 = vadd.f32 %v632_v10, %v575_v7 }
 0x250   :  { %v645_v15 = vmax.f32 %v633_v12, 0.0 }
 0x252   :  { %v650_v19 = vpack.c.bf16 %v645_v15, %v644_v14 }
 0x254   :  { %665 = vmatpush.bf16.msrb.mxu2 %v650_v19 }
 0x258   :  { %666 = vmatpush.bf16.msrb.mxu2 %v649_v24 }
 0x25c   :  { %667 = vmatpush.bf16.msrb.mxu2 %v648_v26 }
 0x25f   :  { %736 = vmatmul.msk.bf16.vlgmr.msrb.gmra.mxu2 %vm449_vm0, %v88_v27 }
 0x2e2   :  { %v669_v28 = vpop.f32.mrf.mxu2 }
 0x2e3   :  { %v670_v29 = vadd.f32 %v669_v28, %v655_v59 }
 0x2e5   :  { %673 = vst [vmem:[%s1008_s3] sm:$0x7] %v670_v29 }
 0x2ea   :  { %v671_v30 = vpop.f32.mrf.mxu2 }
 0x2eb   :  { %678 = vsyncpa [#allocation3], 1 }
 0x2ec   :  { %679 = vsyncpa [#allocation5], 1 }

</bundles_post_ra>
